<compile_context>
chip_gen: v6e
topology: v6e:2x2x1
jax: 0.10.0
libtpu: 0.0.40
codegen_flags: <defaults>
</compile_context>

<pallas_src>
import numpy as np
import jax
import jax.numpy as jnp
from jax.experimental import pallas as pl
from jax.experimental.pallas import tpu as pltpu

# ------------------------- config (small, GPT-J-like) -------------------------
B = 2            # batch
S = 8            # sequence length
D = 32           # hidden size (n_embd)
INNER = 4 * D    # intermediate_size = 128


# ------------------------------- Pallas kernel --------------------------------
def gptj_mlp_kernel(x_ref, w1_ref, b1_ref, w2_ref, b2_ref, o_ref, acc_ref):
    # grid = (token_tiles [parallel], inner_tiles [arbitrary/reduction])
    j = pl.program_id(1)

    @pl.when(j == 0)
    def _init():
        acc_ref[...] = jnp.zeros_like(acc_ref)

    # fc_in slice: (tm, D) @ (D, ti) -> (tm, ti).  bf16 MXU operands, f32 accum.
    x = x_ref[...].astype(jnp.bfloat16)
    z = jnp.dot(x, w1_ref[...], preferred_element_type=jnp.float32) + b1_ref[...]

    # quick_gelu: z * sigmoid(1.702 * z) -- bf16 (feeds the bf16 fc_out matmul).
    zb = z.astype(jnp.bfloat16)
    h = zb * jax.nn.sigmoid(1.702 * zb)

    # fc_out partial: (tm, ti) @ (ti, D), accumulated over the inner grid axis.
    acc_ref[...] += jnp.dot(h, w2_ref[...], preferred_element_type=jnp.float32)

    @pl.when(j == pl.num_programs(1) - 1)
    def _store():
        o_ref[...] = (acc_ref[...] + b2_ref[...]).astype(o_ref.dtype)
    # dropout (resid_pdrop) is identity at inference -> nothing to emit.


# ------------------------------ one-time param prep ----------------------------
def prepare_gptj_mlp_params(params):
    """One-time conversion of torch nn.Linear-convention params (weight: (out, in))
    into the kernel layout: (in, out) bf16 weights, f32 row biases.
    Call once at parameter-load time, NOT per forward call."""
    return {
        "w1": jnp.asarray(params["fi_w"], jnp.float32).T.astype(jnp.bfloat16),  # (D, INNER)
        "b1": jnp.asarray(params["fi_b"], jnp.float32).reshape(1, -1),          # (1, INNER)
        "w2": jnp.asarray(params["fo_w"], jnp.float32).T.astype(jnp.bfloat16),  # (INNER, D)
        "b2": jnp.asarray(params["fo_b"], jnp.float32).reshape(1, -1),          # (1, D)
    }


# ------------------------------ tiling / VMEM helpers ---------------------------
def _vmem_capacity_bytes():
    try:
        return int(pltpu.get_tpu_info().vmem_capacity_bytes)
    except Exception:
        return 64 << 20  # conservative fallback (v7x per-TC VMEM)


def _pick_tiles(n_tokens, inner, vmem_cap_bytes):
    # Token tile: whole flattened batch when small (single 'parallel' step, 0 extra
    # per-step overhead); 256 rows at real sizes (megacore shards across TCs).
    tm = n_tokens if n_tokens <= 256 else 256
    while tm > 8 and n_tokens % tm:
        tm -= 8
    if n_tokens % tm:
        tm = n_tokens
    # Inner (reduction) tile: cap by VMEM generation -- 1024 keeps double-buffered
    # bf16 weight tiles + the f32 accumulator inside v7x's 64 MiB; 2048 on 128 MiB
    # parts (v5e / v6e).
    cap = 2048 if vmem_cap_bytes >= (96 << 20) else 1024
    ti = inner if inner <= cap else cap
    while ti > 128 and inner % ti:
        ti -= 128
    if inner % ti:
        ti = inner
    return tm, ti


def _vmem_block_bytes(tm, ti, d, x_itemsize, out_itemsize):
    dbl = 2  # BlockSpec double-buffering
    total = 0
    total += dbl * tm * d * x_itemsize       # x block
    total += dbl * d * ti * 2                # w1 tile (bf16)
    total += dbl * ti * 4                    # b1 tile (f32)
    total += dbl * ti * d * 2                # w2 tile (bf16)
    total += dbl * d * 4                     # b2 (f32)
    total += dbl * tm * d * out_itemsize     # output block
    total += tm * d * 4                      # f32 accumulator scratch
    return total


# ----------------------------------- wrapper ------------------------------------
def gptj_mlp_pallas(x, prepared, *, out_dtype=None):
    """x: (B, S, D).  prepared: output of prepare_gptj_mlp_params (done once)."""
    Bb, Ss, Dd = x.shape
    N = Bb * Ss
    x2 = x.reshape(N, Dd)
    w1, b1, w2, b2 = prepared["w1"], prepared["b1"], prepared["w2"], prepared["b2"]
    inner = w1.shape[1]
    out_dtype = x.dtype if out_dtype is None else out_dtype

    vmem_cap = _vmem_capacity_bytes()
    tm, ti = _pick_tiles(N, inner, vmem_cap)

    compiler_kwargs = dict(dimension_semantics=("parallel", "arbitrary"))
    est = _vmem_block_bytes(tm, ti, Dd, x2.dtype.itemsize, jnp.dtype(out_dtype).itemsize)
    if est > (24 << 20):  # above ~3/4 of the 32 MiB default scoped limit -> raise it
        compiler_kwargs["vmem_limit_bytes"] = min(int(est * 3 // 2), int(vmem_cap * 9 // 10))

    out = pl.pallas_call(
        gptj_mlp_kernel,
        out_shape=jax.ShapeDtypeStruct((N, Dd), out_dtype),
        grid=(N // tm, inner // ti),
        in_specs=[
            pl.BlockSpec((tm, Dd), lambda i, j: (i, 0)),     # x tokens (fetched once per i)
            pl.BlockSpec((Dd, ti), lambda i, j: (0, j)),     # fc_in weight tile
            pl.BlockSpec((1, ti), lambda i, j: (0, j)),      # fc_in bias tile
            pl.BlockSpec((ti, Dd), lambda i, j: (j, 0)),     # fc_out weight tile
            pl.BlockSpec((1, Dd), lambda i, j: (0, 0)),      # fc_out bias
        ],
        out_specs=pl.BlockSpec((tm, Dd), lambda i, j: (i, 0)),
        scratch_shapes=[pltpu.VMEM((tm, Dd), jnp.float32)],
        compiler_params=pltpu.CompilerParams(**compiler_kwargs),
    )(x2, w1, b1, w2, b2)

    # TODO(synk): non-divisible token / inner extents at odd real-world shapes would
    # need a ragged last tile (pl.BoundedSlice) or host-side padding.
    return out.reshape(Bb, Ss, Dd)


# ----------------------------- pure-JAX reference ------------------------------
def reference(x, params):
    z = x @ params["fi_w"].T + params["fi_b"]
    z = z * jax.nn.sigmoid(1.702 * z)
    return z @ params["fo_w"].T + params["fo_b"]


# ------------------------------------ main -------------------------------------
if __name__ == "__main__":
    key = jax.random.PRNGKey(0)
    ks = jax.random.split(key, 5)

    torch_params = {
        "fi_w": (0.02 * jax.random.normal(ks[0], (INNER, D))).astype(jnp.float32),  # (out, in)
        "fi_b": (0.01 * jax.random.normal(ks[1], (INNER,))).astype(jnp.float32),
        "fo_w": (0.02 * jax.random.normal(ks[2], (D, INNER))).astype(jnp.float32),  # (out, in)
        "fo_b": (0.01 * jax.random.normal(ks[3], (D,))).astype(jnp.float32),
    }
    x = jax.random.normal(ks[4], (B, S, D), jnp.float32)

    # One-time weight layout conversion (transpose / bf16 cast) -- not per call.
    prepared = jax.block_until_ready(prepare_gptj_mlp_params(torch_params))

    out = jax.block_until_ready(gptj_mlp_pallas(x, prepared))
    ref = reference(x, torch_params)

    # tolerance accounts for bf16 MXU operands + bf16 quick_gelu (f32 accumulation)
    np.testing.assert_allclose(np.asarray(out), np.asarray(ref), rtol=2e-2, atol=2e-3)

    print("KERNEL_OK")
</pallas_src>

<mosaic_0001>
module attributes {stable_mosaic.version = 11 : i64} {
  func.func @gptj_mlp_kernel(%arg0: i32, %arg1: i32, %arg2: memref<16x32xf32, #tpu.memory_space<vmem>>, %arg3: memref<32x128xbf16, #tpu.memory_space<vmem>>, %arg4: memref<1x128xf32, #tpu.memory_space<vmem>>, %arg5: memref<128x32xbf16, #tpu.memory_space<vmem>>, %arg6: memref<1x32xf32, #tpu.memory_space<vmem>>, %arg7: memref<16x32xf32, #tpu.memory_space<vmem>>, %arg8: memref<16x32xf32, #tpu.memory_space<vmem>>) attributes {dimension_semantics = [#tpu.dimension_semantics<parallel>, #tpu.dimension_semantics<arbitrary>], iteration_bounds = array<i64: 1, 1>, scalar_prefetch = 0 : i64, scratch_operands = 1 : i64, tpu.core_type = #tpu.core_type<tc>, window_params = [{transform_indices = @transform_0, window_bounds = array<i64: 16, 32>}, {transform_indices = @transform_1, window_bounds = array<i64: 32, 128>}, {transform_indices = @transform_2, window_bounds = array<i64: 1, 128>}, {transform_indices = @transform_3, window_bounds = array<i64: 128, 32>}, {pipeline_mode = #tpu.pipeline_mode<synchronous>, transform_indices = @transform_4, window_bounds = array<i64: 1, 32>}, {transform_indices = @transform_5, window_bounds = array<i64: 16, 32>}]} {
    %c0_i32 = arith.constant 0 : i32
    %0 = arith.cmpi eq, %arg1, %c0_i32 : i32
    %1 = arith.extui %0 : i1 to i32
    %c0_i32_0 = arith.constant 0 : i32
    %2 = arith.cmpi ne, %1, %c0_i32_0 : i32
    scf.if %2 {
      %cst_17 = arith.constant 0.000000e+00 : f32
      %27 = vector.broadcast %cst_17 : f32 to vector<16x32xf32>
      %c0_18 = arith.constant 0 : index
      %c0_19 = arith.constant 0 : index
      %28 = vector.load %arg8[%c0_18, %c0_19] : memref<16x32xf32, #tpu.memory_space<vmem>>, vector<16x32xf32>
      tpu.vector_store %arg8[%c0_18, %c0_19], %27 {strides = array<i32>} : memref<16x32xf32, #tpu.memory_space<vmem>>, vector<16x32xf32>,
    } else {
    }
    %c0 = arith.constant 0 : index
    %c0_1 = arith.constant 0 : index
    %3 = vector.load %arg2[%c0, %c0_1] : memref<16x32xf32, #tpu.memory_space<vmem>>, vector<16x32xf32>
    %4 = arith.truncf %3 : vector<16x32xf32> to vector<16x32xbf16>
    %c0_2 = arith.constant 0 : index
    %c0_3 = arith.constant 0 : index
    %5 = vector.load %arg3[%c0_2, %c0_3] : memref<32x128xbf16, #tpu.memory_space<vmem>>, vector<32x128xbf16>
    %cst = arith.constant dense<0.000000e+00> : vector<16x128xf32>
    %6 = tpu.matmul %4, %5, %cst {dimension_numbers = #tpu.dot_dimension_numbers<[1], [0], [0], [1], [0, 0, 1, 1], [], []>} : vector<16x32xbf16>, vector<32x128xbf16>, vector<16x128xf32> -> vector<16x128xf32>
    %c0_4 = arith.constant 0 : index
    %c0_5 = arith.constant 0 : index
    %7 = vector.load %arg4[%c0_4, %c0_5] : memref<1x128xf32, #tpu.memory_space<vmem>>, vector<1x128xf32>
    %8 = vector.broadcast %7 : vector<1x128xf32> to vector<16x128xf32>
    %9 = arith.addf %6, %8 : vector<16x128xf32>
    %10 = arith.truncf %9 : vector<16x128xf32> to vector<16x128xbf16>
    %cst_6 = arith.constant 1.703130e+00 : bf16
    %11 = vector.broadcast %cst_6 : bf16 to vector<16x128xbf16>
    %12 = arith.mulf %11, %10 : vector<16x128xbf16>
    %13 = arith.negf %12 : vector<16x128xbf16>
    %14 = math.exp %13 : vector<16x128xbf16>
    %cst_7 = arith.constant 1.000000e+00 : bf16
    %15 = vector.broadcast %cst_7 : bf16 to vector<16x128xbf16>
    %16 = arith.addf %15, %14 : vector<16x128xbf16>
    %17 = arith.divf %15, %16 : vector<16x128xbf16>
    %18 = arith.mulf %10, %17 : vector<16x128xbf16>
    %c0_8 = arith.constant 0 : index
    %c0_9 = arith.constant 0 : index
    %19 = vector.load %arg8[%c0_8, %c0_9] : memref<16x32xf32, #tpu.memory_space<vmem>>, vector<16x32xf32>
    %c0_10 = arith.constant 0 : index
    %c0_11 = arith.constant 0 : index
    %20 = vector.load %arg5[%c0_10, %c0_11] : memref<128x32xbf16, #tpu.memory_space<vmem>>, vector<128x32xbf16>
    %cst_12 = arith.constant dense<0.000000e+00> : vector<16x32xf32>
    %21 = tpu.matmul %18, %20, %cst_12 {dimension_numbers = #tpu.dot_dimension_numbers<[1], [0], [0], [1], [0, 0, 1, 1], [], []>} : vector<16x128xbf16>, vector<128x32xbf16>, vector<16x32xf32> -> vector<16x32xf32>
    %22 = arith.addf %19, %21 : vector<16x32xf32>
    %c0_13 = arith.constant 0 : index
    %c0_14 = arith.constant 0 : index
    %23 = vector.load %arg8[%c0_13, %c0_14] : memref<16x32xf32, #tpu.memory_space<vmem>>, vector<16x32xf32>
    tpu.vector_store %arg8[%c0_13, %c0_14], %22 {strides = array<i32>} : memref<16x32xf32, #tpu.memory_space<vmem>>, vector<16x32xf32>,
    %c0_i32_15 = arith.constant 0 : i32
    %24 = arith.cmpi eq, %arg1, %c0_i32_15 : i32
    %25 = arith.extui %24 : i1 to i32
    %c0_i32_16 = arith.constant 0 : i32
    %26 = arith.cmpi ne, %25, %c0_i32_16 : i32
    scf.if %26 {
      %c0_17 = arith.constant 0 : index
      %c0_18 = arith.constant 0 : index
      %27 = vector.load %arg8[%c0_17, %c0_18] : memref<16x32xf32, #tpu.memory_space<vmem>>, vector<16x32xf32>
      %c0_19 = arith.constant 0 : index
      %c0_20 = arith.constant 0 : index
      %28 = vector.load %arg6[%c0_19, %c0_20] : memref<1x32xf32, #tpu.memory_space<vmem>>, vector<1x32xf32>
      %29 = vector.broadcast %28 : vector<1x32xf32> to vector<16x32xf32>
      %30 = arith.addf %27, %29 : vector<16x32xf32>
      %c0_21 = arith.constant 0 : index
      %c0_22 = arith.constant 0 : index
      %31 = vector.load %arg7[%c0_21, %c0_22] : memref<16x32xf32, #tpu.memory_space<vmem>>, vector<16x32xf32>
      tpu.vector_store %arg7[%c0_21, %c0_22], %30 {strides = array<i32>} : memref<16x32xf32, #tpu.memory_space<vmem>>, vector<16x32xf32>,
    } else {
    }
    return
  }
  func.func @transform_0(%arg0: i32, %arg1: i32) -> (i32, i32) {
    %c0_i32 = arith.constant 0 : i32
    %c0_i32_0 = arith.constant 0 : i32
    return %arg0, %c0_i32 : i32, i32
  }
  func.func @transform_1(%arg0: i32, %arg1: i32) -> (i32, i32) {
    %c0_i32 = arith.constant 0 : i32
    %c0_i32_0 = arith.constant 0 : i32
    return %c0_i32, %arg1 : i32, i32
  }
  func.func @transform_2(%arg0: i32, %arg1: i32) -> (i32, i32) {
    %c0_i32 = arith.constant 0 : i32
    %c0_i32_0 = arith.constant 0 : i32
    return %c0_i32, %arg1 : i32, i32
  }
  func.func @transform_3(%arg0: i32, %arg1: i32) -> (i32, i32) {
    %c0_i32 = arith.constant 0 : i32
    %c0_i32_0 = arith.constant 0 : i32
    return %arg1, %c0_i32 : i32, i32
  }
  func.func @transform_4(%arg0: i32, %arg1: i32) -> (i32, i32) {
    %c0_i32 = arith.constant 0 : i32
    %c0_i32_0 = arith.constant 0 : i32
    %c0_i32_1 = arith.constant 0 : i32
    return %c0_i32, %c0_i32_0 : i32, i32
  }
  func.func @transform_5(%arg0: i32, %arg1: i32) -> (i32, i32) {
    %c0_i32 = arith.constant 0 : i32
    %c0_i32_0 = arith.constant 0 : i32
    return %arg0, %c0_i32 : i32, i32
  }
}

</mosaic_0001>

<bundles_post_ra>
// kernel: tpu_custom_call.1
= control target key start
LH: loop header
LB: loop body
LE: loop exit
PB: predicated region body
PF: predicated region fallthrough
CT: control target
= control target key end

     0   :  { %v350_v1 = vmov 0.0   ;;  %vm351_vm0 = vmmov 0   ;;  %vm28_vm1 = vcmask 261120   ;;  %s437_s0 = inlined_call_operand.vmem [shape: f32[16,32], index: 0, kind: input, shape index: {}]   ;;  %s438_s1 = inlined_call_operand.vmem [shape: bf16[32,128], index: 1, kind: input, shape index: {}]   ;;  %s439_s2 = inlined_call_operand.vmem [shape: f32[1,128], index: 2, kind: input, shape index: {}]   ;;  %s440_s3 = inlined_call_operand.vmem [shape: bf16[128,32], index: 3, kind: input, shape index: {}]   ;;  %s441_s4 = inlined_call_operand.vmem [shape: f32[1,32], index: 4, kind: input, shape index: {}]   ;;  %s442_s5 = inlined_call_operand.hbm [shape: f32[16,32], index: 5, kind: output, shape index: {}]  }
   0x1   :  { %v314_v0 = vld [vmem:[%s438_s1 + $0x8] sm:$0xff]   ;;  %281 = vmatprep.subr.bf16.mxu0 %v350_v1  ;;  %289 = vmatprep.subr.bf16.mxu1 %v350_v1  ;;  %v315_v2 = vld [vmem:[%s438_s1] sm:$0xff]   ;;  %29 = vst.msk [vmem:[#allocation2] sm:$0xff] %vm28_vm1, %v350_v1  ;;  %30 = vst.msk [vmem:[#allocation2 + $0x8] sm:$0xff] %vm28_vm1, %v350_v1 }
   0x2   :  { %282 = vmatpush3.bf16.msra.mxu0 %v314_v0  ;;  %285 = vmatprep.mubr.msk.bf16.mxu0 %vm351_vm0, %v350_v1  ;;  %v31_v3 = vld [vmem:[%s437_s0] sm:$0xff]  ;;  %v32_v4 = vld [vmem:[%s437_s0 + $0x8] sm:$0xff] }
   0x3   :  { %283 = vmatprep.subr.bf16.mxu0 %v350_v1  ;;  %305 = vmatprep.mubr.msk.bf16.mxu1 %vm351_vm0, %v350_v1  ;;  %v33_v5 = vpack.c.bf16 %v32_v4, %v31_v3 }
   0x6   :  { %284 = vmatpush3.bf16.msra.mxu0 %v315_v2 }
   0x7   :  { %10 = vsyncpa [#allocation4], 0  ;;  %v316_v6 = vld [vmem:[%s440_s3 + $0x38] sm:$0xff]   ;;  %v317_v7 = vld [vmem:[%s440_s3 + $0x30] sm:$0xff]   ;;  %s352_s17 = smov [#allocation3]  }
   0x8   :  { %290 = vmatpush3.bf16.msra.mxu1 %v316_v6  ;;  %v318_v8 = vld [vmem:[%s440_s3 + $0x28] sm:$0xff]   ;;  %v319_v9 = vld [vmem:[%s440_s3 + $0x20] sm:$0xff]   ;;  %v320_v10 = vld [vmem:[%s440_s3 + $0x18] sm:$0xff]   ;;  %s244_s18 = sshll.u32 %s352_s17, 4  ;;  %s245_s18 = int_to_ptr.vmem [resolvable:$true] %s244_s18 }
   0x9   :  { %286 = vmatmul.mubr.msk.bf16.vlgmr.msra.gmra.mxu0 %vm28_vm1, %v33_v5  ;;  %291 = vmatprep.subr.bf16.mxu1 %v350_v1  ;;  %v321_v11 = vld [vmem:[%s440_s3 + $0x10] sm:$0xff]   ;;  %v322_v12 = vld [vmem:[%s440_s3 + $0x8] sm:$0xff]   ;;  %v323_v13 = vld [vmem:[%s440_s3] sm:$0xff]   ;;  %s328_s19 = scalar_lea.vmem %s245_s18, 256  ;;  %p333_p1 = scmp.lt.s32.totalorder %s245_s18, %s245_s18 }
   0xa   :  { %v255_v15 = vld [vmem:[%s439_s2] ss:$0 sm:$0xff]  ;;  %v113_v33 = vld [vmem:[#allocation2 + $0x8] sm:$0xff]  ;;  %p329_p0 = scmp.ne.s32.totalorder %s245_s18, %s328_s19  ;;  %p334_p2 = scmp.lt.s32.totalorder %s328_s19, %s328_s19 }
   0xb   :  { %v112_v29 = vld [vmem:[#allocation2] sm:$0xff] }
   0xc   :  { %292 = vmatpush3.bf16.msra.mxu1 %v317_v7  ;;  %v268_v37 = vld [vmem:[%s441_s4] ss:$0 sm:$0xff]  ;;  %p335_p3 = por %p334_p2, %p333_p1 }
   0xd   :  { %293 = vmatprep.subr.bf16.mxu1 %v350_v1 }
   0xe   :  { %p336_p4 = pnand %p335_p3, %p329_p0 }
  0x10   :  { %294 = vmatpush3.bf16.msra.mxu1 %v318_v8 }
  0x11   :  { %295 = vmatprep.subr.bf16.mxu1 %v350_v1 }
  0x14   :  { %296 = vmatpush3.bf16.msra.mxu1 %v319_v9 }
  0x15   :  { %297 = vmatprep.subr.bf16.mxu1 %v350_v1 }
  0x18   :  { %298 = vmatpush3.bf16.msra.mxu1 %v320_v10 }
  0x19   :  { %299 = vmatprep.subr.bf16.mxu1 %v350_v1 }
  0x1c   :  { %300 = vmatpush3.bf16.msra.mxu1 %v321_v11 }
  0x1d   :  { %301 = vmatprep.subr.bf16.mxu1 %v350_v1 }
  0x20   :  { %302 = vmatpush3.bf16.msra.mxu1 %v322_v12 }
  0x21   :  { %303 = vmatprep.subr.bf16.mxu1 %v350_v1 }
  0x24   :  { %304 = vmatpush3.bf16.msra.mxu1 %v323_v13 }
  0xc9   :  { %v95_v14 = vpop.f32.mrf.mxu0 }
  0xca   :  { %v96_v18 = vadd.f32 %v255_v15, %v95_v14 }
  0xcb   :  { %v287_v16 = vpop.f32.mrf.mxu0 }
  0xcd   :  { %v98_v17 = vpop.f32.mrf.mxu0 }
  0xce   :  { %v99_v19 = vadd.f32 %v255_v15, %v98_v17 }
  0xcf   :  { %v288_v20 = vpop.f32.mrf.mxu0 }
  0xd0   :  { %v102_v21 = vpack.c.bf16 %v99_v19, %v96_v18 }
  0xd2   :  { %v259_v22 = vmul.bf16 3218784218, %v102_v21 }
  0xd4   :  { %v106_v23 = vmul.bf16 1069105081, %v259_v22 }
  0xd6   :  { %324 = vpow.bf16 %v106_v23 }
  0xe4   :  { %v325_v24 = vpop.eup %324 }
  0xe5   :  { %v108_v25 = vadd.bf16 1065369472, %v325_v24 }
  0xe7   :  { %326 = vrcp.bf16 %v108_v25 }
  0xf5   :  { %v327_v26 = vpop.eup %326 }
  0xf6   :  { %v110_v27 = vmul.bf16 1065369472, %v327_v26 }
  0xf8   :  { %v111_v28 = vmul.bf16 %v110_v27, %v102_v21 }
  0xfa   :  { %306 = vmatmul.mubr.bf16.vlgmr.msra.gmra.mxu1 %v111_v28 }
 0x1ba   :  { %v212_v30 = vpop.f32.mrf.mxu1 }
 0x1bb   :  { %v219_v31 = vadd.f32 %v212_v30, %v112_v29 }
 0x1bc   :  { %v307_v32 = vpop.f32.mrf.mxu1 }
 0x1bd   :  { %221 = vst.msk [vmem:[#allocation2] sm:$0xff] %vm28_vm1, %v219_v31 }
 0x1be   :  { %v215_v34 = vpop.f32.mrf.mxu1 }
 0x1bf   :  { %v220_v35 = vadd.f32 %v215_v34, %v113_v33 }
 0x1c0   :  { %v308_v36 = vpop.f32.mrf.mxu1 }
 0x1c1   :  { %222 = vst.msk [vmem:[#allocation2 + $0x8] sm:$0xff] %vm28_vm1, %v220_v35 }
 0x1c4   :  { %v226_v38 = vld [vmem:[#allocation2] sm:$0xff] }
 0x1c5   :  { %v235_v39 = vadd.f32 %v268_v37, %v226_v38 }
 0x1c7   :  { %237 = vst.msk [vmem:[#allocation3] sm:$0xff] %vm28_vm1, %v235_v39 }
 0x1c8   :  { %v227_v40 = vld [vmem:[#allocation2 + $0x8] sm:$0xff] }
 0x1c9   :  { %v236_v41 = vadd.f32 %v268_v37, %v227_v40 }
 0x1cb   :  { %238 = vst.msk [vmem:[#allocation3 + $0x8] sm:$0xff] %vm28_vm1, %v236_v41 }
 0x1cc   :  { %339 = shalt.err (!%p336_p4)
}
 0x1cd   :  { %s353_s20 = smov 128   ;;  %s354_s4 = smov 8  }
 0x1ce   :  { %250 = dma.vmem_to_hbm [thread:$0]  %s245_s18, 256, %s442_s5, [#allocation4], %s353_s20, %s353_s20, %s354_s4  }
 0x1cf   :  { %348 = dma.done.wait [#allocation4], 256  }
 0x1d0   :  { %349 = vsyncadd [#allocation4], 4294967040 }
 0x1d1   :  { %254 = vsyncpa [#allocation4], 1 }

</bundles_post_ra>
